<compile_context>
chip_gen: v5e
topology: v5e:2x2
jax: 0.10.0
libtpu: 0.0.40
codegen_flags: <defaults>
</compile_context>

<pallas_src>
import jax
import jax.numpy as jnp
from jax.experimental import pallas as pl
from jax.experimental.pallas import tpu as pltpu

LANES = 128  # lane width of a vreg; keep the output last dim exactly lane-dense


def _const_broadcast_kernel(c_ref, o_ref):
    """Copy the resident constant slab into this grid step's batch slice.

    c_ref: (rows, 128)  constant, resident in VMEM across all grid steps
    o_ref: (rows, 128)  output tile for batch index pl.program_id(0) (batch dim squeezed)
    """
    o_ref[...] = c_ref[...]


def constant_input_forward(const_param, x):
    """Pallas equivalent of ConstantInput.forward(input): repeat const over batch."""
    batch = x.shape[0]
    _, C, D, H, W = const_param.shape
    n = C * D * H * W

    # Lane-dense packing: flatten to 1D, pad to a multiple of 128, view as (rows, 128).
    rows = pl.cdiv(n, LANES)
    n_pad = rows * LANES
    flat = const_param.reshape(-1)
    if n_pad != n:
        flat = jnp.pad(flat, (0, n_pad - n))
    c2d = flat.reshape(rows, LANES)

    bytes_elem = jnp.dtype(const_param.dtype).itemsize
    cost = pl.CostEstimate(
        flops=0,
        transcendentals=0,
        bytes_accessed=(1 + batch) * rows * LANES * bytes_elem,  # 1 read + batch writes
    )

    out2d = pl.pallas_call(
        _const_broadcast_kernel,
        out_shape=jax.ShapeDtypeStruct((batch, rows, LANES), const_param.dtype),
        grid=(batch,),
        in_specs=[
            # Same block index every grid step -> constant stays resident in VMEM.
            pl.BlockSpec((rows, LANES), lambda b: (0, 0)),
        ],
        # Batch dim squeezed out of the kernel view; full lane-dense (rows, 128) tile.
        out_specs=pl.BlockSpec((None, rows, LANES), lambda b: (b, 0, 0)),
        compiler_params=pltpu.CompilerParams(
            dimension_semantics=("parallel",),  # independent batch tiles; v7x 2-TC split
        ),
        cost_estimate=cost,
    )(c2d)

    # Strip lane padding and restore the (batch, C, D, H, W) layout (plumbing only).
    out = out2d.reshape(batch, n_pad)[:, :n].reshape(batch, C, D, H, W)
    return out


def constant_input_reference(const_param, x):
    """Pure-JAX reference: torch's `self.input.repeat(batch, 1, 1, 1, 1)`."""
    batch = x.shape[0]
    return jnp.broadcast_to(const_param, (batch,) + const_param.shape[1:])


if __name__ == "__main__":
    key = jax.random.PRNGKey(0)
    k_const, k_x = jax.random.split(key)

    # Small shapes consistent with the module: channel=8, size=(6, 7, 6), batch=2.
    batch = 2
    channel = 8
    size = (6, 7, 6)

    # The learned constant parameter (torch.randn(1, channel, *size) analogue).
    const_param = jax.random.normal(k_const, (1, channel, *size), jnp.float32)
    # Forward only uses input.shape[0]; give it a realistic latent-style input.
    x = jax.random.normal(k_x, (batch, 32), jnp.float32)

    out = constant_input_forward(const_param, x)
    out = jax.block_until_ready(out)

    ref = constant_input_reference(const_param, x)
    assert out.shape == (batch, channel, *size), out.shape
    assert jnp.array_equal(out, ref), "mismatch vs reference"

    # Exercise a second batch size to confirm the repeat semantics track input.shape[0].
    x4 = jax.random.normal(k_x, (4, 32), jnp.float32)
    out4 = jax.block_until_ready(constant_input_forward(const_param, x4))
    assert out4.shape == (4, channel, *size)
    assert jnp.array_equal(out4, constant_input_reference(const_param, x4))

    print("KERNEL_OK")
</pallas_src>

<mosaic_0001>
module attributes {stable_mosaic.version = 11 : i64} {
  func.func @_const_broadcast_kernel(%arg0: i32, %arg1: memref<16x128xf32, #tpu.memory_space<vmem>>, %arg2: memref<1x16x128xf32, #tpu.memory_space<vmem>>) attributes {dimension_semantics = [#tpu.dimension_semantics<parallel>], iteration_bounds = array<i64: 2>, scalar_prefetch = 0 : i64, scratch_operands = 0 : i64, tpu.core_type = #tpu.core_type<tc>, window_params = [{pipeline_mode = #tpu.pipeline_mode<synchronous>, transform_indices = @transform_0, window_bounds = array<i64: 16, 128>}, {transform_indices = @transform_1, window_bounds = array<i64: 1, 16, 128>}]} {
    %c0 = arith.constant 0 : index
    %c0_0 = arith.constant 0 : index
    %0 = vector.load %arg1[%c0, %c0_0] : memref<16x128xf32, #tpu.memory_space<vmem>>, vector<16x128xf32>
    %c0_1 = arith.constant 0 : index
    %c0_2 = arith.constant 0 : index
    %c0_3 = arith.constant 0 : index
    %1 = vector.load %arg2[%c0_1, %c0_2, %c0_3] : memref<1x16x128xf32, #tpu.memory_space<vmem>>, vector<1x16x128xf32>
    %2 = vector.shape_cast %1 : vector<1x16x128xf32> to vector<16x128xf32>
    %3 = vector.shape_cast %0 : vector<16x128xf32> to vector<1x16x128xf32>
    tpu.vector_store %arg2[%c0_1, %c0_2, %c0_3], %3 {strides = array<i32>} : memref<1x16x128xf32, #tpu.memory_space<vmem>>, vector<1x16x128xf32>,
    return
  }
  func.func @transform_0(%arg0: i32) -> (i32, i32) {
    %c0_i32 = arith.constant 0 : i32
    %c0_i32_0 = arith.constant 0 : i32
    %c0_i32_1 = arith.constant 0 : i32
    return %c0_i32, %c0_i32_0 : i32, i32
  }
  func.func @transform_1(%arg0: i32) -> (i32, i32, i32) {
    %c0_i32 = arith.constant 0 : i32
    %c0_i32_0 = arith.constant 0 : i32
    %c0_i32_1 = arith.constant 0 : i32
    return %arg0, %c0_i32, %c0_i32_0 : i32, i32, i32
  }
}

</mosaic_0001>

<bundles_post_ra>
// kernel: tpu_custom_call.1
= control target key start
LH: loop header
LB: loop body
LE: loop exit
PB: predicated region body
PF: predicated region fallthrough
CT: control target
= control target key end

     0   :  { %6 = vsyncpa [#allocation3], 0  ;;  %s463_s0 = inlined_call_operand.hbm [shape: f32[16,128], index: 0, kind: input, shape index: {}]   ;;  %s464_s1 = inlined_call_operand.hbm [shape: f32[2,16,128], index: 1, kind: output, shape index: {}]  }
   0x1   :  { %7 = vsyncpa [#allocation4], 0 }
   0x2   :  { %9 = vsyncpa [#allocation4 + $0x1], 0  ;;  %s373_s6 = smov 0   ;;  %s375_s7 = smov 0  }
   0x3   :  { %s377_s8 = smov 0   ;;  %s379_s9 = smov 0  }
   0x4 LB: > { %s394_s10 = sadd.s32 4294967295, %s356_s9   ;;  %s194_s11 = sadd.s32 4294967294, %s356_s9   ;;  %s356_s9 = sphi %s379_s9, %s470_s9   ;;  %s352_s8 = sphi %s377_s8, %s469_s8   ;;  %s348_s7 = sphi %s375_s7, %s468_s7   ;;  %s344_s6 = sphi %s373_s6, %s467_s6  }
   0x5   : > { %s398_s12 = sadd.s32 1, %s356_s9   ;;  %s43_s13 = sadd.s32 1, %s352_s8 }
   0x6   : > { %s40_s14 = ssub.s32 %s356_s9, %s398_s12  ;;  %p53_p0 = scmp.ne.s32.totalorder %s352_s8, %s348_s7 }
   0x7   : > { %p41_p1 = scmp.eq.s32.totalorder %s40_s14, 0  ;;  %p54_p2 = scmp.eq.s32.totalorder %s394_s10, 1 }
   0x8   : > { %p59_p3 = scmp.ne.s32.totalorder %s348_s7, %s344_s6  ;;  %p60_p4 = scmp.eq.s32.totalorder %s194_s11, 1 }
   0x9   : > { %s409_s15 = scalar_select %p41_p1, %s352_s8, %s43_s13  }
   0xa   : > { %p411_p5 = por %p54_p2, %p53_p0  ;;  %p415_p6 = por %p60_p4, %p59_p3 }
   0xb   : > { %p195_p7 = scmp.ge.s32.totalorder %s356_s9, 1  ;;  %p67_p8 = scmp.lt.s32.totalorder %s356_s9, 3 }
   0xc   : > { %p220_p9 = scmp.eq.s32.totalorder %s394_s10, 0  ;;  %s78_s20 = sshll.u32 %s463_s0, 4  ;;  %s79_s20 = int_to_ptr.hbm [resolvable:$true] %s78_s20 }
   0xd   : > { %p68_p10 = pnand %p195_p7, %p67_p8  ;;  %s358_s21 = smov [#allocation2]  }
   0xe   : > { %s80_s22 = sshll.u32 %s358_s21, 4  ;;  %s359_s23 = smov 128   ;;  %s81_s22 = int_to_ptr.vmem [resolvable:$true] %s80_s22 }
   0xf   : > { %p212_p11 = pneg %p68_p10  ;;  %s360_s24 = smov 8  }
  0x10   : > { %96 = sbr.rel (%p68_p10) target bundleno = 39 (0x27), region = 24 }
  0x11   : > { %p213_p12 = pnand %p220_p9, %p212_p11 }
  0x13   : > { %215 = dma.hbm_to_vmem [thread:$0]  (!%p213_p12), %s79_s20, 256, %s81_s22, [#allocation3], %s359_s23, %s359_s23, %s360_s24  }
  0x15   : > { %335 = dma.done.wait (%p220_p9), [#allocation3], 256  }
  0x16   : > { %337 = vsyncadd (%p220_p9), [#allocation3], 4294967040  ;;  %s109_s25 = sand.u32 1, %s348_s7   ;;  %s205_s26 = sshll.u32 %s394_s10, 4  ;;  %v112_v0 = vld [vmem:[#allocation2] sm:$0xff]  ;;  %v113_v1 = vld [vmem:[#allocation2 + $0x8] sm:$0xff] }
  0x17   : > { %s199_s27 = sshll.u32 %s109_s25, 4  ;;  %s128_s30 = scalar_lea.hbm %s464_s1, %s205_s26 }
  0x18   : > { %s111_s2 = scalar_lea.vmem [#allocation5], %s199_s27  ;;  %s131_s4 = sshll.u32 %s128_s30, 4  ;;  %s132_s4 = int_to_ptr.hbm [resolvable:$true] %s131_s4 }
  0x19   : > { %s129_s3 = sshll.u32 %s111_s2, 4  ;;  %114 = vst [vmem:[%s111_s2] sm:$0xff] %v112_v0  ;;  %s117_s5 = scalar_lea.sflag [#allocation4], %s109_s25  ;;  %s130_s3 = int_to_ptr.vmem [resolvable:$true] %s129_s3 }
  0x1a   : > { %115 = vst [vmem:[%s111_s2 + $0x8] sm:$0xff] %v113_v1  ;;  %s304_s11 = sshra.s32 %s132_s4, 4  ;;  %s310_s18 = scalar_lea.hbm %s464_s1, 32  ;;  %s305_s11 = int_to_ptr.hbm [resolvable:$true] %s304_s11 }
  0x1b   : > { %s306_s13 = scalar_lea.hbm %s305_s11, 16  ;;  %p311_p2 = scmp.lt.s32.totalorder %s305_s11, %s464_s1 }
  0x1c   : > { %p307_p13 = scmp.ne.s32.totalorder %s305_s11, %s306_s13  ;;  %p312_p3 = scmp.lt.s32.totalorder %s310_s18, %s306_s13 }
  0x1e   : > { %p308_p0 = pnand %p307_p13, %p411_p5  ;;  %p313_p4 = por %p312_p3, %p311_p2 }
  0x20   : > { %p309_p1 = pneg %p308_p0 }
  0x22   : > { %p314_p7 = pnand %p313_p4, %p309_p1 }
  0x24   : > { %317 = shalt.err (!%p314_p7)
}
  0x25   : > { %s361_s21 = smov 128   ;;  %s362_s22 = smov 8  }
  0x26   : > { %210 = dma.vmem_to_hbm [thread:$0]  (%p411_p5), %s130_s3, 256, %s132_s4, %s117_s5, %s361_s21, %s361_s21, %s362_s22  }
  0x27 PF: > { %p222_p8 = scmp.ge.s32.totalorder %s356_s9, 2  ;;  %s146_s23 = sand.u32 1, %s344_s6  }
  0x28   : > { %s147_s24 = scalar_lea.sflag [#allocation4], %s146_s23 }
  0x29   : > { %p217_p9 = pnand %p222_p8, %p415_p6 }
  0x2b   : > { %p218_p10 = pneg %p217_p9 }
  0x2d   : > { %339 = dma.done.wait (%p218_p10), %s147_s24, 256  }
  0x2e   : > { %341 = vsyncadd (%p218_p10), %s147_s24, 4294967040  ;;  %p12_p11 = scmp.ge.s32.totalorder %s398_s12, 4   ;;  %s467_s6 = smov %s348_s7 }
  0x2f   : > { %s468_s7 = smov %s352_s8  ;;  %s469_s8 = smov %s409_s15 }
  0x30   : > { %s470_s9 = smov %s398_s12  ;;  %14 = sbr.rel (!%p12_p11) target bundleno = 4 (0x4), region = 61 }
  0x35   :  { %153 = vsyncpa [#allocation3], 1 }
  0x36   :  { %155 = vsyncpa [#allocation3 + $0x1], 1 }
  0x37   :  { %156 = vsyncpa [#allocation4], 1 }
  0x38   :  { %158 = vsyncpa [#allocation4 + $0x1], 1 }

</bundles_post_ra>
